<compile_context>
chip_gen: v7x
topology: tpu7x:2x2x1
jax: 0.10.0
libtpu: 0.0.40
codegen_flags: <defaults>
</compile_context>

<pallas_src>
import jax
import jax.numpy as jnp
from jax.experimental import pallas as pl
from jax.experimental.pallas import tpu as pltpu

# ----------------------------- problem sizes -----------------------------
B = 2        # batch of graphs
E = 2        # n_edge (edge types)
N = 16       # nodes per graph
D = 32       # in_dim (node feature dim)
F1 = 64      # first fc dim (fc_dims = [F1, 1] -> Linear(D,F1)+Tanh, Linear(F1,1))
OUT = 1      # final output dim
N_CONV = 3   # number of gated graph conv layers

BN = B * N   # 32  (batch-stacked node rows)
D2 = 2 * D   # 64
D4 = 4 * D   # 128
ED = E * D   # 64

# Per-layer weight blob layout, shape (LB_ROWS, LB_COLS):
#   [0:2D , 0:4D ]      packed GRU weight  [[Wih_r Wih_z Wih_n   0  ],
#                                           [Whh_r Whh_z   0   Whh_n]]
#   [2D   , 0:4D ]      packed GRU bias    [bih_r+bhh_r | bih_z+bhh_z | bih_n | bhh_n]
#   [0:D  , 4D:4D+E*D]  concatenated edge weights [W_e0 | W_e1]
LB_ROWS = 72            # 2D + 1 rounded up to a multiple of 8 sublanes
LB_COLS = D4 + ED       # 192

# FC blob layout, shape (FC_ROWS, F1):
#   [0:D , :]    W1 (D, F1)
#   [32  , :]    b1
#   [40  , :]    W2^T  (W2 is (F1, 1))
#   [48  , 0]    b2
FC_ROWS = 56


# --------------------------- fully fused kernel ----------------------------
def ggnn_fused_kernel(a_bd_ref, p_ref, h0_ref, blob_ref, fc_ref, out_ref):
    """Whole GGNN forward for the whole (tiny) batch in one invocation.

    a_bd_ref : (E, B*N, B*N)   block-diagonal adjacencies
    p_ref    : (B, B*N)        pooling matrix (atom_vec scattered per graph)
    h0_ref   : (B*N, D)        batch-stacked node features
    blob_ref : (N_CONV, LB_ROWS, LB_COLS) per-layer packed weights
    fc_ref   : (FC_ROWS, F1)   packed FC head
    out_ref  : (B, OUT)
    """
    h = h0_ref[...]                                   # (BN, D), stays on-chip
    a0 = a_bd_ref[0]                                  # (BN, BN)
    a1 = a_bd_ref[1]                                  # (BN, BN)

    for l in range(N_CONV):                           # static layer loop (fused)
        w_gru = blob_ref[l, 0:D2, 0:D4]               # (2D, 4D)
        b_gru = blob_ref[l, D2:D2 + 1, 0:D4]          # (1, 4D)
        w_edge = blob_ref[l, 0:D, D4:D4 + ED]         # (D, E*D)

        # ---- message passing: M = sum_e A_bd[e] @ (H W_e), edge weights concat'd ----
        hw = jnp.dot(h, w_edge, preferred_element_type=jnp.float32)      # (BN, E*D)
        msg = (jnp.dot(a0, hw[:, 0:D], preferred_element_type=jnp.float32)
               + jnp.dot(a1, hw[:, D:ED], preferred_element_type=jnp.float32))  # (BN, D)

        # ---- GRU cell: single fused (32,64)@(64,128) matmul, biases folded ----
        x = jnp.concatenate([msg, h], axis=1)                            # (BN, 2D)
        g = jnp.dot(x, w_gru, preferred_element_type=jnp.float32) + b_gru  # (BN, 4D)
        r = jax.nn.sigmoid(g[:, 0:D])
        z = jax.nn.sigmoid(g[:, D:2 * D])
        n = jnp.tanh(g[:, 2 * D:3 * D] + r * g[:, 3 * D:4 * D])
        h = (1.0 - z) * n + z * h
        # dropout: identity in eval mode

    # ---- masked node-sum pooling (pooling matmul) + fully connected head ----
    pooled = jnp.dot(p_ref[...], h, preferred_element_type=jnp.float32)  # (B, D)
    w1 = fc_ref[0:D, :]                                                  # (D, F1)
    b1 = fc_ref[32:33, :]                                                # (1, F1)
    w2t = fc_ref[40:41, :]                                               # (1, F1)
    b2 = fc_ref[48:49, 0:1]                                              # (1, 1)
    hid = jnp.tanh(jnp.dot(pooled, w1, preferred_element_type=jnp.float32) + b1)  # (B, F1)
    out = jnp.sum(hid * w2t, axis=1, keepdims=True) + b2                 # (B, OUT)
    out_ref[...] = out.astype(out_ref.dtype)


def _cost_estimate(args):
    flops_layer = (2 * BN * D * ED            # H @ W_cat
                   + 2 * E * BN * BN * D      # block-diag adjacency dots
                   + 2 * BN * D2 * D4)        # fused GRU matmul
    flops = (N_CONV * flops_layer
             + 2 * B * BN * D                 # pooling matmul
             + 2 * B * D * F1 + 2 * B * F1 * OUT)
    transcendentals = N_CONV * 3 * BN * D + B * F1
    bytes_accessed = sum(int(a.size) * a.dtype.itemsize for a in args) + B * OUT * 4
    return pl.CostEstimate(flops=flops,
                           transcendentals=transcendentals,
                           bytes_accessed=bytes_accessed)


def ggnn_fused(a_bd, p_mat, h0_flat, layer_blob, fc_blob):
    args = (a_bd, p_mat, h0_flat, layer_blob, fc_blob)
    vmem_spec = pl.BlockSpec(memory_space=pltpu.MemorySpace.VMEM)
    return pl.pallas_call(
        ggnn_fused_kernel,
        out_shape=jax.ShapeDtypeStruct((B, OUT), jnp.float32),
        in_specs=[vmem_spec] * len(args),
        out_specs=vmem_spec,
        cost_estimate=_cost_estimate(args),
    )(*args)


# --------------------------- parameter packing -----------------------------
def pack_params(params):
    """Per-layer dicts -> packed per-layer blob + packed FC blob."""
    layer_blocks = []
    for lp in params["conv"]:
        w_ih, w_hh = lp["w_ih"], lp["w_hh"]           # (D, 3D), gate cols r,z,n
        b_ih, b_hh = lp["b_ih"], lp["b_hh"]           # (1, 3D)

        w_packed = jnp.zeros((D2, D4), jnp.float32)
        w_packed = w_packed.at[0:D, 0:D].set(w_ih[:, 0:D])               # r (input)
        w_packed = w_packed.at[D:D2, 0:D].set(w_hh[:, 0:D])              # r (hidden)
        w_packed = w_packed.at[0:D, D:2 * D].set(w_ih[:, D:2 * D])       # z (input)
        w_packed = w_packed.at[D:D2, D:2 * D].set(w_hh[:, D:2 * D])      # z (hidden)
        w_packed = w_packed.at[0:D, 2 * D:3 * D].set(w_ih[:, 2 * D:3 * D])   # n (input only)
        w_packed = w_packed.at[D:D2, 3 * D:4 * D].set(w_hh[:, 2 * D:3 * D])  # n (hidden only)

        b_packed = jnp.concatenate(
            [b_ih[:, 0:D] + b_hh[:, 0:D],
             b_ih[:, D:2 * D] + b_hh[:, D:2 * D],
             b_ih[:, 2 * D:3 * D],
             b_hh[:, 2 * D:3 * D]], axis=1)                              # (1, 4D)

        we_cat = jnp.concatenate([lp["w_edge"][e] for e in range(E)], axis=1)  # (D, E*D)

        blk = jnp.zeros((LB_ROWS, LB_COLS), jnp.float32)
        blk = blk.at[0:D2, 0:D4].set(w_packed)
        blk = blk.at[D2:D2 + 1, 0:D4].set(b_packed)
        blk = blk.at[0:D, D4:D4 + ED].set(we_cat)
        layer_blocks.append(blk)
    layer_blob = jnp.stack(layer_blocks, axis=0)      # (N_CONV, 72, 192)

    fc_blob = jnp.zeros((FC_ROWS, F1), jnp.float32)
    fc_blob = fc_blob.at[0:D, :].set(params["fc_w1"])
    fc_blob = fc_blob.at[32:33, :].set(params["fc_b1"])
    fc_blob = fc_blob.at[40:41, :].set(params["fc_w2"].T)
    fc_blob = fc_blob.at[48:49, 0:1].set(params["fc_b2"])
    return layer_blob, fc_blob


# ------------------------------ full forward ------------------------------
def ggnn_forward(adj, node_feat, atom_vec, params):
    layer_blob, fc_blob = pack_params(params)
    h0_flat = node_feat.reshape(BN, D)                # batch-stacked rows

    # block-diagonal adjacencies (E, B*N, B*N)
    a_bd = jnp.zeros((E, BN, BN), jnp.float32)
    for e in range(E):
        for b in range(B):
            a_bd = a_bd.at[e, b * N:(b + 1) * N, b * N:(b + 1) * N].set(adj[b, e])

    # pooling matrix (B, B*N): row b holds atom_vec[b] in cols b*N:(b+1)*N
    p_mat = jnp.zeros((B, BN), jnp.float32)
    for b in range(B):
        p_mat = p_mat.at[b, b * N:(b + 1) * N].set(atom_vec[b, :, 0])

    return ggnn_fused(a_bd, p_mat, h0_flat, layer_blob, fc_blob)


# ------------------------- pure-JAX reference model ------------------------
def ggnn_reference(adj, node_feat, atom_vec, params):
    h = node_feat
    for lp in params["conv"]:
        hw = jnp.einsum("bnd,edk->benk", h, lp["w_edge"])
        msg = jnp.einsum("benm,bemk->bnk", adj, hw)
        gi = msg @ lp["w_ih"] + lp["b_ih"]
        gh = h @ lp["w_hh"] + lp["b_hh"]
        i_r, i_z, i_n = jnp.split(gi, 3, axis=-1)
        h_r, h_z, h_n = jnp.split(gh, 3, axis=-1)
        r = jax.nn.sigmoid(i_r + h_r)
        z = jax.nn.sigmoid(i_z + h_z)
        n = jnp.tanh(i_n + r * h_n)
        h = (1.0 - z) * n + z * h
    pooled = jnp.sum(h * atom_vec, axis=1)
    hid = jnp.tanh(pooled @ params["fc_w1"] + params["fc_b1"])
    return hid @ params["fc_w2"] + params["fc_b2"]


# ----------------------------- parameter init ------------------------------
def xavier_uniform(key, shape):
    fan_in, fan_out = shape[-2], shape[-1]
    limit = jnp.sqrt(6.0 / (fan_in + fan_out))
    return jax.random.uniform(key, shape, jnp.float32, -limit, limit)


def init_params(key):
    params = {"conv": []}
    gru_lim = 1.0 / jnp.sqrt(jnp.float32(D))
    for _ in range(N_CONV):
        key, k1, k2, k3, k4, k5 = jax.random.split(key, 6)
        params["conv"].append({
            "w_edge": xavier_uniform(k1, (E, D, D)),
            # stored transposed vs. PyTorch GRUCell ((3D,D)->(D,3D)) for x @ W
            "w_ih": jax.random.uniform(k2, (D, 3 * D), jnp.float32, -gru_lim, gru_lim),
            "w_hh": jax.random.uniform(k3, (D, 3 * D), jnp.float32, -gru_lim, gru_lim),
            "b_ih": jax.random.uniform(k4, (1, 3 * D), jnp.float32, -gru_lim, gru_lim),
            "b_hh": jax.random.uniform(k5, (1, 3 * D), jnp.float32, -gru_lim, gru_lim),
        })
    key, kw1, kw2 = jax.random.split(key, 3)
    params["fc_w1"] = xavier_uniform(kw1, (D, F1))
    params["fc_b1"] = jnp.zeros((1, F1), jnp.float32)
    params["fc_w2"] = xavier_uniform(kw2, (F1, OUT))
    params["fc_b2"] = jnp.zeros((1, OUT), jnp.float32)
    return params


# ----------------------------------- main ----------------------------------
if __name__ == "__main__":
    key = jax.random.PRNGKey(0)
    key, ka, kn, km, kp = jax.random.split(key, 5)

    adj = jax.random.bernoulli(ka, 0.3, (B, E, N, N)).astype(jnp.float32)
    node_feat = jax.random.normal(kn, (B, N, D), jnp.float32)
    atom_vec = jax.random.bernoulli(km, 0.8, (B, N, 1)).astype(jnp.float32)

    params = init_params(kp)

    out = jax.block_until_ready(ggnn_forward(adj, node_feat, atom_vec, params))
    ref = jax.block_until_ready(ggnn_reference(adj, node_feat, atom_vec, params))

    assert out.shape == (B, OUT), out.shape
    assert jnp.allclose(out, ref, atol=1e-3, rtol=1e-3), (out, ref)
    print("KERNEL_OK")
</pallas_src>

<mosaic_0001>
module attributes {stable_mosaic.version = 11 : i64} {
  func.func @ggnn_fused_kernel(%arg0: memref<2x32x32xf32, #tpu.memory_space<vmem>>, %arg1: memref<2x32xf32, #tpu.memory_space<vmem>>, %arg2: memref<32x32xf32, #tpu.memory_space<vmem>>, %arg3: memref<3x72x192xf32, #tpu.memory_space<vmem>>, %arg4: memref<56x64xf32, #tpu.memory_space<vmem>>, %arg5: memref<2x1xf32, #tpu.memory_space<vmem>>) attributes {dimension_semantics = [], scalar_prefetch = 0 : i64, scratch_operands = 0 : i64, tpu.core_type = #tpu.core_type<tc>} {
    %c0 = arith.constant 0 : index
    %c0_0 = arith.constant 0 : index
    %0 = vector.load %arg2[%c0, %c0_0] : memref<32x32xf32, #tpu.memory_space<vmem>>, vector<32x32xf32>
    %c0_1 = arith.constant 0 : index
    %c0_2 = arith.constant 0 : index
    %c0_3 = arith.constant 0 : index
    %1 = vector.load %arg0[%c0_1, %c0_2, %c0_3] : memref<2x32x32xf32, #tpu.memory_space<vmem>>, vector<1x32x32xf32>
    %2 = vector.shape_cast %1 : vector<1x32x32xf32> to vector<32x32xf32>
    %c1 = arith.constant 1 : index
    %c0_4 = arith.constant 0 : index
    %c0_5 = arith.constant 0 : index
    %3 = vector.load %arg0[%c1, %c0_4, %c0_5] : memref<2x32x32xf32, #tpu.memory_space<vmem>>, vector<1x32x32xf32>
    %4 = vector.shape_cast %3 : vector<1x32x32xf32> to vector<32x32xf32>
    %c0_6 = arith.constant 0 : index
    %c0_7 = arith.constant 0 : index
    %c0_8 = arith.constant 0 : index
    %5 = vector.load %arg3[%c0_6, %c0_7, %c0_8] : memref<3x72x192xf32, #tpu.memory_space<vmem>>, vector<1x64x128xf32>
    %6 = vector.shape_cast %5 : vector<1x64x128xf32> to vector<64x128xf32>
    %c0_9 = arith.constant 0 : index
    %c64 = arith.constant 64 : index
    %c0_10 = arith.constant 0 : index
    %7 = vector.load %arg3[%c0_9, %c64, %c0_10] : memref<3x72x192xf32, #tpu.memory_space<vmem>>, vector<1x1x128xf32>
    %8 = vector.shape_cast %7 : vector<1x1x128xf32> to vector<1x128xf32>
    %c0_11 = arith.constant 0 : index
    %c0_12 = arith.constant 0 : index
    %c128 = arith.constant 128 : index
    %9 = vector.load %arg3[%c0_11, %c0_12, %c128] : memref<3x72x192xf32, #tpu.memory_space<vmem>>, vector<1x32x64xf32>
    %10 = vector.shape_cast %9 : vector<1x32x64xf32> to vector<32x64xf32>
    %cst = arith.constant dense<0.000000e+00> : vector<32x64xf32>
    %11 = tpu.matmul %0, %10, %cst {dimension_numbers = #tpu.dot_dimension_numbers<[1], [0], [0], [1], [0, 0, 1, 1], [], []>} : vector<32x32xf32>, vector<32x64xf32>, vector<32x64xf32> -> vector<32x64xf32>
    %12 = vector.extract_strided_slice %11 {offsets = [0, 0], sizes = [32, 32], strides = [1, 1]} : vector<32x64xf32> to vector<32x32xf32>
    %cst_13 = arith.constant dense<0.000000e+00> : vector<32x32xf32>
    %13 = tpu.matmul %2, %12, %cst_13 {dimension_numbers = #tpu.dot_dimension_numbers<[1], [0], [0], [1], [0, 0, 1, 1], [], []>} : vector<32x32xf32>, vector<32x32xf32>, vector<32x32xf32> -> vector<32x32xf32>
    %14 = vector.extract_strided_slice %11 {offsets = [0, 32], sizes = [32, 32], strides = [1, 1]} : vector<32x64xf32> to vector<32x32xf32>
    %cst_14 = arith.constant dense<0.000000e+00> : vector<32x32xf32>
    %15 = tpu.matmul %4, %14, %cst_14 {dimension_numbers = #tpu.dot_dimension_numbers<[1], [0], [0], [1], [0, 0, 1, 1], [], []>} : vector<32x32xf32>, vector<32x32xf32>, vector<32x32xf32> -> vector<32x32xf32>
    %16 = arith.addf %13, %15 : vector<32x32xf32>
    %17 = tpu.concatenate %16, %0 in 1 : vector<32x32xf32>, vector<32x32xf32> -> vector<32x64xf32>
    %cst_15 = arith.constant dense<0.000000e+00> : vector<32x128xf32>
    %18 = tpu.matmul %17, %6, %cst_15 {dimension_numbers = #tpu.dot_dimension_numbers<[1], [0], [0], [1], [0, 0, 1, 1], [], []>} : vector<32x64xf32>, vector<64x128xf32>, vector<32x128xf32> -> vector<32x128xf32>
    %19 = vector.broadcast %8 : vector<1x128xf32> to vector<32x128xf32>
    %20 = arith.addf %18, %19 : vector<32x128xf32>
    %21 = vector.extract_strided_slice %20 {offsets = [0, 0], sizes = [32, 32], strides = [1, 1]} : vector<32x128xf32> to vector<32x32xf32>
    %22 = arith.negf %21 : vector<32x32xf32>
    %23 = math.exp %22 : vector<32x32xf32>
    %cst_16 = arith.constant 1.000000e+00 : f32
    %24 = vector.broadcast %cst_16 : f32 to vector<32x32xf32>
    %25 = arith.addf %24, %23 : vector<32x32xf32>
    %26 = arith.divf %24, %25 : vector<32x32xf32>
    %27 = vector.extract_strided_slice %20 {offsets = [0, 32], sizes = [32, 32], strides = [1, 1]} : vector<32x128xf32> to vector<32x32xf32>
    %28 = arith.negf %27 : vector<32x32xf32>
    %29 = math.exp %28 : vector<32x32xf32>
    %cst_17 = arith.constant 1.000000e+00 : f32
    %30 = vector.broadcast %cst_17 : f32 to vector<32x32xf32>
    %31 = arith.addf %30, %29 : vector<32x32xf32>
    %32 = arith.divf %30, %31 : vector<32x32xf32>
    %33 = vector.extract_strided_slice %20 {offsets = [0, 64], sizes = [32, 32], strides = [1, 1]} : vector<32x128xf32> to vector<32x32xf32>
    %34 = vector.extract_strided_slice %20 {offsets = [0, 96], sizes = [32, 32], strides = [1, 1]} : vector<32x128xf32> to vector<32x32xf32>
    %35 = arith.mulf %26, %34 : vector<32x32xf32>
    %36 = arith.addf %33, %35 : vector<32x32xf32>
    %37 = math.tanh %36 : vector<32x32xf32>
    %cst_18 = arith.constant 1.000000e+00 : f32
    %38 = vector.broadcast %cst_18 : f32 to vector<32x32xf32>
    %39 = arith.subf %38, %32 : vector<32x32xf32>
    %40 = arith.mulf %39, %37 : vector<32x32xf32>
    %41 = arith.mulf %32, %0 : vector<32x32xf32>
    %42 = arith.addf %40, %41 : vector<32x32xf32>
    %c1_19 = arith.constant 1 : index
    %c0_20 = arith.constant 0 : index
    %c0_21 = arith.constant 0 : index
    %43 = vector.load %arg3[%c1_19, %c0_20, %c0_21] : memref<3x72x192xf32, #tpu.memory_space<vmem>>, vector<1x64x128xf32>
    %44 = vector.shape_cast %43 : vector<1x64x128xf32> to vector<64x128xf32>
    %c1_22 = arith.constant 1 : index
    %c64_23 = arith.constant 64 : index
    %c0_24 = arith.constant 0 : index
    %45 = vector.load %arg3[%c1_22, %c64_23, %c0_24] : memref<3x72x192xf32, #tpu.memory_space<vmem>>, vector<1x1x128xf32>
    %46 = vector.shape_cast %45 : vector<1x1x128xf32> to vector<1x128xf32>
    %c1_25 = arith.constant 1 : index
    %c0_26 = arith.constant 0 : index
    %c128_27 = arith.constant 128 : index
    %47 = vector.load %arg3[%c1_25, %c0_26, %c128_27] : memref<3x72x192xf32, #tpu.memory_space<vmem>>, vector<1x32x64xf32>
    %48 = vector.shape_cast %47 : vector<1x32x64xf32> to vector<32x64xf32>
    %cst_28 = arith.constant dense<0.000000e+00> : vector<32x64xf32>
    %49 = tpu.matmul %42, %48, %cst_28 {dimension_numbers = #tpu.dot_dimension_numbers<[1], [0], [0], [1], [0, 0, 1, 1], [], []>} : vector<32x32xf32>, vector<32x64xf32>, vector<32x64xf32> -> vector<32x64xf32>
    %50 = vector.extract_strided_slice %49 {offsets = [0, 0], sizes = [32, 32], strides = [1, 1]} : vector<32x64xf32> to vector<32x32xf32>
    %cst_29 = arith.constant dense<0.000000e+00> : vector<32x32xf32>
    %51 = tpu.matmul %2, %50, %cst_29 {dimension_numbers = #tpu.dot_dimension_numbers<[1], [0], [0], [1], [0, 0, 1, 1], [], []>} : vector<32x32xf32>, vector<32x32xf32>, vector<32x32xf32> -> vector<32x32xf32>
    %52 = vector.extract_strided_slice %49 {offsets = [0, 32], sizes = [32, 32], strides = [1, 1]} : vector<32x64xf32> to vector<32x32xf32>
    %cst_30 = arith.constant dense<0.000000e+00> : vector<32x32xf32>
    %53 = tpu.matmul %4, %52, %cst_30 {dimension_numbers = #tpu.dot_dimension_numbers<[1], [0], [0], [1], [0, 0, 1, 1], [], []>} : vector<32x32xf32>, vector<32x32xf32>, vector<32x32xf32> -> vector<32x32xf32>
    %54 = arith.addf %51, %53 : vector<32x32xf32>
    %55 = tpu.concatenate %54, %42 in 1 : vector<32x32xf32>, vector<32x32xf32> -> vector<32x64xf32>
    %cst_31 = arith.constant dense<0.000000e+00> : vector<32x128xf32>
    %56 = tpu.matmul %55, %44, %cst_31 {dimension_numbers = #tpu.dot_dimension_numbers<[1], [0], [0], [1], [0, 0, 1, 1], [], []>} : vector<32x64xf32>, vector<64x128xf32>, vector<32x128xf32> -> vector<32x128xf32>
    %57 = vector.broadcast %46 : vector<1x128xf32> to vector<32x128xf32>
    %58 = arith.addf %56, %57 : vector<32x128xf32>
    %59 = vector.extract_strided_slice %58 {offsets = [0, 0], sizes = [32, 32], strides = [1, 1]} : vector<32x128xf32> to vector<32x32xf32>
    %60 = arith.negf %59 : vector<32x32xf32>
    %61 = math.exp %60 : vector<32x32xf32>
    %cst_32 = arith.constant 1.000000e+00 : f32
    %62 = vector.broadcast %cst_32 : f32 to vector<32x32xf32>
    %63 = arith.addf %62, %61 : vector<32x32xf32>
    %64 = arith.divf %62, %63 : vector<32x32xf32>
    %65 = vector.extract_strided_slice %58 {offsets = [0, 32], sizes = [32, 32], strides = [1, 1]} : vector<32x128xf32> to vector<32x32xf32>
    %66 = arith.negf %65 : vector<32x32xf32>
    %67 = math.exp %66 : vector<32x32xf32>
    %cst_33 = arith.constant 1.000000e+00 : f32
    %68 = vector.broadcast %cst_33 : f32 to vector<32x32xf32>
    %69 = arith.addf %68, %67 : vector<32x32xf32>
    %70 = arith.divf %68, %69 : vector<32x32xf32>
    %71 = vector.extract_strided_slice %58 {offsets = [0, 64], sizes = [32, 32], strides = [1, 1]} : vector<32x128xf32> to vector<32x32xf32>
    %72 = vector.extract_strided_slice %58 {offsets = [0, 96], sizes = [32, 32], strides = [1, 1]} : vector<32x128xf32> to vector<32x32xf32>
    %73 = arith.mulf %64, %72 : vector<32x32xf32>
    %74 = arith.addf %71, %73 : vector<32x32xf32>
    %75 = math.tanh %74 : vector<32x32xf32>
    %cst_34 = arith.constant 1.000000e+00 : f32
    %76 = vector.broadcast %cst_34 : f32 to vector<32x32xf32>
    %77 = arith.subf %76, %70 : vector<32x32xf32>
    %78 = arith.mulf %77, %75 : vector<32x32xf32>
    %79 = arith.mulf %70, %42 : vector<32x32xf32>
    %80 = arith.addf %78, %79 : vector<32x32xf32>
    %c2 = arith.constant 2 : index
    %c0_35 = arith.constant 0 : index
    %c0_36 = arith.constant 0 : index
    %81 = vector.load %arg3[%c2, %c0_35, %c0_36] : memref<3x72x192xf32, #tpu.memory_space<vmem>>, vector<1x64x128xf32>
    %82 = vector.shape_cast %81 : vector<1x64x128xf32> to vector<64x128xf32>
    %c2_37 = arith.constant 2 : index
    %c64_38 = arith.constant 64 : index
    %c0_39 = arith.constant 0 : index
    %83 = vector.load %arg3[%c2_37, %c64_38, %c0_39] : memref<3x72x192xf32, #tpu.memory_space<vmem>>, vector<1x1x128xf32>
    %84 = vector.shape_cast %83 : vector<1x1x128xf32> to vector<1x128xf32>
    %c2_40 = arith.constant 2 : index
    %c0_41 = arith.constant 0 : index
    %c128_42 = arith.constant 128 : index
    %85 = vector.load %arg3[%c2_40, %c0_41, %c128_42] : memref<3x72x192xf32, #tpu.memory_space<vmem>>, vector<1x32x64xf32>
    %86 = vector.shape_cast %85 : vector<1x32x64xf32> to vector<32x64xf32>
    %cst_43 = arith.constant dense<0.000000e+00> : vector<32x64xf32>
    %87 = tpu.matmul %80, %86, %cst_43 {dimension_numbers = #tpu.dot_dimension_numbers<[1], [0], [0], [1], [0, 0, 1, 1], [], []>} : vector<32x32xf32>, vector<32x64xf32>, vector<32x64xf32> -> vector<32x64xf32>
    %88 = vector.extract_strided_slice %87 {offsets = [0, 0], sizes = [32, 32], strides = [1, 1]} : vector<32x64xf32> to vector<32x32xf32>
    %cst_44 = arith.constant dense<0.000000e+00> : vector<32x32xf32>
    %89 = tpu.matmul %2, %88, %cst_44 {dimension_numbers = #tpu.dot_dimension_numbers<[1], [0], [0], [1], [0, 0, 1, 1], [], []>} : vector<32x32xf32>, vector<32x32xf32>, vector<32x32xf32> -> vector<32x32xf32>
    %90 = vector.extract_strided_slice %87 {offsets = [0, 32], sizes = [32, 32], strides = [1, 1]} : vector<32x64xf32> to vector<32x32xf32>
    %cst_45 = arith.constant dense<0.000000e+00> : vector<32x32xf32>
    %91 = tpu.matmul %4, %90, %cst_45 {dimension_numbers = #tpu.dot_dimension_numbers<[1], [0], [0], [1], [0, 0, 1, 1], [], []>} : vector<32x32xf32>, vector<32x32xf32>, vector<32x32xf32> -> vector<32x32xf32>
    %92 = arith.addf %89, %91 : vector<32x32xf32>
    %93 = tpu.concatenate %92, %80 in 1 : vector<32x32xf32>, vector<32x32xf32> -> vector<32x64xf32>
    %cst_46 = arith.constant dense<0.000000e+00> : vector<32x128xf32>
    %94 = tpu.matmul %93, %82, %cst_46 {dimension_numbers = #tpu.dot_dimension_numbers<[1], [0], [0], [1], [0, 0, 1, 1], [], []>} : vector<32x64xf32>, vector<64x128xf32>, vector<32x128xf32> -> vector<32x128xf32>
    %95 = vector.broadcast %84 : vector<1x128xf32> to vector<32x128xf32>
    %96 = arith.addf %94, %95 : vector<32x128xf32>
    %97 = vector.extract_strided_slice %96 {offsets = [0, 0], sizes = [32, 32], strides = [1, 1]} : vector<32x128xf32> to vector<32x32xf32>
    %98 = arith.negf %97 : vector<32x32xf32>
    %99 = math.exp %98 : vector<32x32xf32>
    %cst_47 = arith.constant 1.000000e+00 : f32
    %100 = vector.broadcast %cst_47 : f32 to vector<32x32xf32>
    %101 = arith.addf %100, %99 : vector<32x32xf32>
    %102 = arith.divf %100, %101 : vector<32x32xf32>
    %103 = vector.extract_strided_slice %96 {offsets = [0, 32], sizes = [32, 32], strides = [1, 1]} : vector<32x128xf32> to vector<32x32xf32>
    %104 = arith.negf %103 : vector<32x32xf32>
    %105 = math.exp %104 : vector<32x32xf32>
    %cst_48 = arith.constant 1.000000e+00 : f32
    %106 = vector.broadcast %cst_48 : f32 to vector<32x32xf32>
    %107 = arith.addf %106, %105 : vector<32x32xf32>
    %108 = arith.divf %106, %107 : vector<32x32xf32>
    %109 = vector.extract_strided_slice %96 {offsets = [0, 64], sizes = [32, 32], strides = [1, 1]} : vector<32x128xf32> to vector<32x32xf32>
    %110 = vector.extract_strided_slice %96 {offsets = [0, 96], sizes = [32, 32], strides = [1, 1]} : vector<32x128xf32> to vector<32x32xf32>
    %111 = arith.mulf %102, %110 : vector<32x32xf32>
    %112 = arith.addf %109, %111 : vector<32x32xf32>
    %113 = math.tanh %112 : vector<32x32xf32>
    %cst_49 = arith.constant 1.000000e+00 : f32
    %114 = vector.broadcast %cst_49 : f32 to vector<32x32xf32>
    %115 = arith.subf %114, %108 : vector<32x32xf32>
    %116 = arith.mulf %115, %113 : vector<32x32xf32>
    %117 = arith.mulf %108, %80 : vector<32x32xf32>
    %118 = arith.addf %116, %117 : vector<32x32xf32>
    %c0_50 = arith.constant 0 : index
    %c0_51 = arith.constant 0 : index
    %119 = vector.load %arg1[%c0_50, %c0_51] : memref<2x32xf32, #tpu.memory_space<vmem>>, vector<2x32xf32>
    %cst_52 = arith.constant dense<0.000000e+00> : vector<2x32xf32>
    %120 = tpu.matmul %119, %118, %cst_52 {dimension_numbers = #tpu.dot_dimension_numbers<[1], [0], [0], [1], [0, 0, 1, 1], [], []>} : vector<2x32xf32>, vector<32x32xf32>, vector<2x32xf32> -> vector<2x32xf32>
    %c0_53 = arith.constant 0 : index
    %c0_54 = arith.constant 0 : index
    %121 = vector.load %arg4[%c0_53, %c0_54] : memref<56x64xf32, #tpu.memory_space<vmem>>, vector<32x64xf32>
    %c32 = arith.constant 32 : index
    %c0_55 = arith.constant 0 : index
    %122 = vector.load %arg4[%c32, %c0_55] : memref<56x64xf32, #tpu.memory_space<vmem>>, vector<1x64xf32>
    %c40 = arith.constant 40 : index
    %c0_56 = arith.constant 0 : index
    %123 = vector.load %arg4[%c40, %c0_56] : memref<56x64xf32, #tpu.memory_space<vmem>>, vector<1x64xf32>
    %c48 = arith.constant 48 : index
    %c0_57 = arith.constant 0 : index
    %124 = vector.load %arg4[%c48, %c0_57] : memref<56x64xf32, #tpu.memory_space<vmem>>, vector<1x1xf32>
    %cst_58 = arith.constant dense<0.000000e+00> : vector<2x64xf32>
    %125 = tpu.matmul %120, %121, %cst_58 {dimension_numbers = #tpu.dot_dimension_numbers<[1], [0], [0], [1], [0, 0, 1, 1], [], []>} : vector<2x32xf32>, vector<32x64xf32>, vector<2x64xf32> -> vector<2x64xf32>
    %126 = vector.broadcast %122 : vector<1x64xf32> to vector<2x64xf32>
    %127 = arith.addf %125, %126 : vector<2x64xf32>
    %128 = math.tanh %127 : vector<2x64xf32>
    %129 = vector.broadcast %123 : vector<1x64xf32> to vector<2x64xf32>
    %130 = arith.mulf %128, %129 : vector<2x64xf32>
    %cst_59 = arith.constant dense<0.000000e+00> : vector<2xf32>
    %131 = vector.multi_reduction <add>, %130, %cst_59 [1] : vector<2x64xf32> to vector<2xf32>
    %132 = vector.shape_cast %131 : vector<2xf32> to vector<2x1xf32>
    %133 = vector.broadcast %124 : vector<1x1xf32> to vector<2x1xf32>
    %134 = arith.addf %132, %133 : vector<2x1xf32>
    %c0_60 = arith.constant 0 : index
    %c0_61 = arith.constant 0 : index
    %135 = vector.load %arg5[%c0_60, %c0_61] : memref<2x1xf32, #tpu.memory_space<vmem>>, vector<2x1xf32>
    tpu.vector_store %arg5[%c0_60, %c0_61], %134 {strides = array<i32>} : memref<2x1xf32, #tpu.memory_space<vmem>>, vector<2x1xf32>,
    return
  }
}

</mosaic_0001>

<bundles_post_ra>
// kernel: tpu_custom_call.1
= control target key start
LH: loop header
LB: loop body
LE: loop exit
PB: predicated region body
PF: predicated region fallthrough
CT: control target
= control target key end

     0   :  { %10 = vsyncpa [#allocation3], 0  ;;  %s2924_s0 = inlined_call_operand.hbm [shape: f32[2,32,32], index: 0, kind: input, shape index: {}]   ;;  %s2925_s1 = inlined_call_operand.vmem [shape: f32[2,32], index: 1, kind: input, shape index: {}]   ;;  %s2926_s2 = inlined_call_operand.hbm [shape: f32[32,32], index: 2, kind: input, shape index: {}]   ;;  %s2927_s3 = inlined_call_operand.hbm [shape: f32[3,72,192], index: 3, kind: input, shape index: {}]   ;;  %s2928_s4 = inlined_call_operand.hbm [shape: f32[56,64], index: 4, kind: input, shape index: {}]   ;;  %s2929_s5 = inlined_call_operand.vmem [shape: f32[2,1], index: 5, kind: output, shape index: {}]  }
   0x1   :  { %11 = vsyncpa [#allocation5], 0 }
   0x2   :  { %12 = vsyncpa [#allocation8], 0  ;;  %s2596_s18 = smov [#allocation4]   ;;  %s2597_s20 = smov [#allocation2]  }
   0x3   :  { %s32_s19 = sshll.u32 %s2596_s18, 4  ;;  %s18_s21 = sshll.u32 %s2597_s20, 4  ;;  %s33_s19 = int_to_ptr.vmem [resolvable:$true] %s32_s19  ;;  %s2640_s21 = int_to_ptr.vmem [resolvable:$true] %s18_s21 }
   0x4   :  { %s2502_s24 = scalar_lea.hbm %s2926_s2, 512 }
   0x5   :  { %p2503_p0 = scmp.ne.s32.totalorder %s2926_s2, %s2502_s24  ;;  %p2506_p1 = scmp.lt.u32.totalorder %s2502_s24, %s2926_s2 }
   0x7   :  { %p2508_p2 = pnand %p2506_p1, %p2503_p0 }
   0x9   :  { %2511 = shalt.err (!%p2508_p2)
}
   0xa   :  { %s2512_s29 = scalar_lea.vmem %s33_s19, 512  ;;  %p2517_p4 = scmp.lt.s32.totalorder %s33_s19, %s33_s19 }
   0xb   :  { %p2513_p3 = scmp.ne.s32.totalorder %s33_s19, %s2512_s29  ;;  %p2518_p5 = scmp.lt.s32.totalorder %s2512_s29, %s2512_s29 }
   0xd   :  { %p2519_p6 = por %p2518_p5, %p2517_p4 }
   0xf   :  { %p2520_p7 = pnand %p2519_p6, %p2513_p3 }
  0x11   :  { %2523 = shalt.err (!%p2520_p7)
}
  0x12   :  { %s2598_s30 = smov 128   ;;  %s2599_s6 = smov 8  }
  0x13   :  { %38 = dma.hbm_to_vmem [thread:$0]  %s2926_s2, 512, %s33_s19, [#allocation5], %s2598_s30, %s2598_s30, %s2599_s6  }
  0x14   :  { %s2524_s11 = scalar_lea.hbm %s2924_s0, 1024 }
  0x15   :  { %p2525_p8 = scmp.ne.s32.totalorder %s2924_s0, %s2524_s11  ;;  %p2528_p9 = scmp.lt.u32.totalorder %s2524_s11, %s2924_s0 }
  0x17   :  { %p2530_p10 = pnand %p2528_p9, %p2525_p8 }
  0x19   :  { %2533 = shalt.err (!%p2530_p10)
}
  0x1a   :  { %s2534_s16 = scalar_lea.vmem %s2640_s21, 1024  ;;  %p2539_p12 = scmp.lt.s32.totalorder %s2640_s21, %s2640_s21 }
  0x1b   :  { %p2535_p11 = scmp.ne.s32.totalorder %s2640_s21, %s2534_s16  ;;  %p2540_p13 = scmp.lt.s32.totalorder %s2534_s16, %s2534_s16 }
  0x1d   :  { %p2541_p0 = por %p2540_p13, %p2539_p12 }
  0x1f   :  { %p2542_p1 = pnand %p2541_p0, %p2535_p11 }
  0x21   :  { %2545 = shalt.err (!%p2542_p1)
}
  0x22   :  { %24 = dma.hbm_to_vmem [thread:$0]  %s2924_s0, 1024, %s2640_s21, [#allocation3], %s2598_s30, %s2598_s30, %s2599_s6  }
  0x23   :  { %s2600_s18 = smov [#allocation6]   ;;  %s2546_s23 = scalar_lea.hbm %s2927_s3, 6912 }
  0x24   :  { %s44_s19 = sshll.u32 %s2600_s18, 4  ;;  %p2547_p2 = scmp.ne.s32.totalorder %s2927_s3, %s2546_s23  ;;  %s45_s19 = int_to_ptr.vmem [resolvable:$true] %s44_s19 }
  0x25   :  { %p2550_p3 = scmp.lt.u32.totalorder %s2546_s23, %s2927_s3 }
  0x27   :  { %p2552_p4 = pnand %p2550_p3, %p2547_p2 }
  0x29   :  { %2555 = shalt.err (!%p2552_p4)
}
  0x2a   :  { %s2556_s28 = scalar_lea.vmem %s45_s19, 6912  ;;  %p2561_p6 = scmp.lt.s32.totalorder %s45_s19, %s45_s19 }
  0x2b   :  { %p2557_p5 = scmp.ne.s32.totalorder %s45_s19, %s2556_s28  ;;  %p2562_p7 = scmp.lt.s32.totalorder %s2556_s28, %s2556_s28 }
  0x2d   :  { %p2563_p8 = por %p2562_p7, %p2561_p6 }
  0x2f   :  { %p2564_p9 = pnand %p2563_p8, %p2557_p5 }
  0x31   :  { %2567 = shalt.err (!%p2564_p9)
}
  0x32   :  { %s2601_s0 = smov 256   ;;  %s2602_s21 = smov 16  }
  0x33   :  { %50 = dma.hbm_to_vmem [thread:$0]  %s2927_s3, 6912, %s45_s19, [#allocation5], %s2601_s0, %s2601_s0, %s2602_s21  }
  0x34   :  { %s2603_s8 = smov [#allocation7]   ;;  %s2568_s12 = scalar_lea.hbm %s2928_s4, 896 }
  0x35   :  { %s56_s9 = sshll.u32 %s2603_s8, 4  ;;  %p2569_p10 = scmp.ne.s32.totalorder %s2928_s4, %s2568_s12  ;;  %s57_s9 = int_to_ptr.vmem [resolvable:$true] %s56_s9 }
  0x36   :  { %p2572_p11 = scmp.lt.u32.totalorder %s2568_s12, %s2928_s4 }
  0x38   :  { %p2574_p12 = pnand %p2572_p11, %p2569_p10 }
  0x3a   :  { %2577 = shalt.err (!%p2574_p12)
}
  0x3b   :  { %s2578_s2 = scalar_lea.vmem %s57_s9, 896  ;;  %p2583_p0 = scmp.lt.s32.totalorder %s57_s9, %s57_s9 }
  0x3c   :  { %p2579_p13 = scmp.ne.s32.totalorder %s57_s9, %s2578_s2  ;;  %p2584_p1 = scmp.lt.s32.totalorder %s2578_s2, %s2578_s2 }
  0x3e   :  { %p2585_p2 = por %p2584_p1, %p2583_p0 }
  0x40   :  { %p2586_p3 = pnand %p2585_p2, %p2579_p13 }
  0x42   :  { %2589 = shalt.err (!%p2586_p3)
}
  0x43   :  { %62 = dma.hbm_to_vmem [thread:$0]  %s2928_s4, 896, %s57_s9, [#allocation8], %s2598_s30, %s2598_s30, %s2599_s6  }
  0x44   :  { %2590 = dma.done.wait [#allocation3], 1024  }
  0x45   :  { %2591 = vsyncadd [#allocation3], 4294966272 }
  0x46   :  { %2592 = dma.done.wait [#allocation5], 7424  }
  0x47   :  { %2593 = vsyncadd [#allocation5], 4294959872 }
  0x48   :  { %2594 = dma.done.wait [#allocation8], 896  }
  0x49   :  { %2595 = vsyncadd [#allocation8], 4294966400  ;;  %vm101_vm0 = vcmask 261120   ;;  %v97_v0 = vld [vmem:[#allocation6 + $0x8] sm:$0xff]  ;;  %v98_v1 = vld [vmem:[#allocation6 + $0x18] sm:$0xff]  ;;  %s2604_s4 = smov 96  }
  0x4a   :  { %v99_v2 = vld [vmem:[#allocation6 + $0x28] sm:$0xff]  ;;  %v2230_v3 = vpack.c.bf16 %v98_v1, %v97_v0  ;;  %v100_v4 = vld [vmem:[#allocation6 + $0x38] sm:$0xff]  ;;  %v75_v5 = vld [vmem:[#allocation4] sm:$0xff]  ;;  %s2605_s30 = smov 32   ;;  %vm425_vm1 = vcmask 523264   ;;  %s2606_s6 = smov 64  }
  0x4b   :  { %v2234_v6 = vpack.c.bf16 %v100_v4, %v99_v2  ;;  %2024 = vmatprep.mubr.msk.f32.mxu0 %vm101_vm0, %v75_v5  ;;  %v76_v7 = vld [vmem:[#allocation4 + $0x8] sm:$0xff]  ;;  %v77_v8 = vld [vmem:[#allocation4 + $0x10] sm:$0xff]  ;;  %v78_v9 = vld [vmem:[#allocation4 + $0x18] sm:$0xff]  ;;  %409 = vrot.lane.b32.xlu1 %v75_v5, %s2605_s30  ;;  %vm2608_vm2 = vmmov 0   ;;  %vm1815_vm3 = vcmask 517120   ;;  %vm1824_vm4 = vcmask 1024  }
  0x4c   :  { %2231 = vmatprep.subr.bf16.mxu0 %v2230_v3  ;;  %v2708_v12 = vld [vmem:[#allocation2 + $0x20] sm:$0xff]  ;;  %v89_v20 = vld [vmem:[#allocation6 + $0x10] sm:$0xff]  ;;  %v2718_v36 = vld [vmem:[#allocation2 + $0x28] sm:$0xff] }
  0x4d   :  { %2233 = vmatpush3.bf16.msra.mxu0 %v2230_v3  ;;  %2038 = vmatprep.mubr.msk.f32.mxu1 %vm101_vm0, %v2708_v12  ;;  %v88_v19 = vld [vmem:[#allocation6] sm:$0xff]  ;;  %v91_v23 = vld [vmem:[#allocation6 + $0x30] sm:$0xff]  ;;  %v2726_v38 = vld [vmem:[#allocation2 + $0x38] sm:$0xff] }
  0x4e   :  { %2235 = vmatprep.subr.bf16.mxu0 %v2234_v6  ;;  %v90_v21 = vld [vmem:[#allocation6 + $0x20] sm:$0xff]  ;;  %v2254_v22 = vpack.c.bf16 %v89_v20, %v88_v19  ;;  %v93_v26 = vld [vmem:[#allocation6 + $0x50] sm:$0xff]  ;;  %v2734_v40 = vld [vmem:[#allocation2 + $0x8] sm:$0xff] }
  0x4f   :  { %v2258_v24 = vpack.c.bf16 %v91_v23, %v90_v21  ;;  %v92_v25 = vld [vmem:[#allocation6 + $0x40] sm:$0xff]  ;;  %411 = vrot.lane.b32.xlu1 %v76_v7, %s2605_s30  ;;  %v2720_v37 = vld [vmem:[#allocation2 + $0x30] sm:$0xff]  ;;  %v2742_v42 = vld [vmem:[#allocation2 + $0x18] sm:$0xff] }
  0x50   :  { %v2262_v27 = vpack.c.bf16 %v93_v26, %v92_v25  ;;  %v2728_v39 = vld [vmem:[#allocation2] sm:$0xff]  ;;  %v2736_v41 = vld [vmem:[#allocation2 + $0x10] sm:$0xff] }
  0x51   :  { %2237 = vmatpush3.bf16.msra.mxu0 %v2234_v6  ;;  %v94_v43 = vld [vmem:[#allocation6 + $0x60] sm:$0xff]  ;;  %v95_v44 = vld [vmem:[#allocation6 + $0x70] sm:$0xff] }
  0x52   :  { %2255 = vmatprep.subr.bf16.mxu0 %v2254_v22  ;;  %v2266_v45 = vpack.c.bf16 %v95_v44, %v94_v43  ;;  %v96_v58 = vld [vmem:[#allocation6 + $0x80] ss:$0 sm:$0xff]  ;;  %v633_v43 = vld [vmem:[#allocation6 + $0x98] sm:$0xff]  ;;  %v634_v44 = vld [vmem:[#allocation6 + $0xa8] sm:$0xff] }
  0x53   :  { %415 = vrot.lane.b32.xlu1 %v78_v9, %s2605_s30 }
  0x54   :  { %2025 = vmatmul.mubr.msk.f32.vlgmr.msra.gmra.mrb[0].mxu0 %vm101_vm0, %v76_v7 }
  0x55   :  { %2027 = vmatprep.mubr.msk.f32.mxu0 %vm101_vm0, %v77_v8  ;;  %2257 = vmatpush3.bf16.msra.mxu0 %v2254_v22 }
  0x56   :  { %2259 = vmatprep.subr.bf16.mxu0 %v2258_v24 }
  0x58   :  { %2028 = vmatmul.mubr.msk.f32.gmra.mrb[2].mxu0 %vm101_vm0, %v78_v9 }
  0x59   :  { %2261 = vmatpush3.bf16.msra.mxu0 %v2258_v24 }
  0x5a   :  { %2263 = vmatprep.subr.bf16.mxu0 %v2262_v27 }
  0x5d   :  { %2265 = vmatpush3.bf16.msra.mxu0 %v2262_v27 }
  0x5e   :  { %2267 = vmatprep.subr.bf16.mxu0 %v2266_v45 }
  0x61   :  { %2269 = vmatpush3.bf16.msra.mxu0 %v2266_v45  ;;  %v635_v45 = vld [vmem:[#allocation6 + $0xb8] sm:$0xff] }
  0xbd   :  { %v2746_v46 = vpop.permute.xlu1 %409 }
  0xc1   :  { %v2748_v47 = vpop.permute.xlu1 %411 }
  0xc5   :  { %v2757_v53 = vpop.permute.xlu1 %415 }
 0x127   :  { %v2026_v10 = vpop.f32.mrb[0].mxu0 }
 0x128   :  { %v180_v11 = vpop.f32.mrb[1].mxu0 }
 0x129   :  { %v2246_v13 = vpack.c.bf16 %v2026_v10, %v180_v11  ;;  %v2388_v14 = vpack.i.bf16 %v2026_v10, %v180_v11 }
 0x12b   :  { %2389 = vrot.lane.b32.xlu0 %v2388_v14, %s2604_s4  ;;  %v2029_v15 = vpop.f32.mrb[2].mxu0 }
 0x12c   :  { %v190_v16 = vpop.f32.mrb[3].mxu0 }
 0x12d   :  { %v2393_v17 = vpack.i.bf16 %v2029_v15, %v190_v16  ;;  %v2250_v18 = vpack.c.bf16 %v2029_v15, %v190_v16 }
 0x12f   :  { %2394 = vrot.lane.b32.xlu0 %v2393_v17, %s2604_s4 }
 0x133   :  { %413 = vrot.lane.b32.xlu0 %v77_v8, %s2605_s30 }
 0x19d   :  { %v2390_v28 = vpop.permute.xlu0 %2389 }
 0x19e   :  { %v2392_v29 = vunpack.i.h.bf16 %v2390_v28  ;;  %v2391_v30 = vunpack.i.l.bf16 %v2390_v28 }
 0x1a0   :  { %v2238_v31 = vpack.c.bf16 %v2392_v29, %v2391_v30 }
 0x1a1   :  { %v2395_v32 = vpop.permute.xlu0 %2394 }
 0x1a2   :  { %v2397_v33 = vunpack.i.h.bf16 %v2395_v32  ;;  %v2396_v34 = vunpack.i.l.bf16 %v2395_v32  ;;  %2239 = vmatprep.subr.bf16.mxu1 %v2238_v31 }
 0x1a3   :  { %2241 = vmatpush3.bf16.msra.mxu1 %v2238_v31 }
 0x1a4   :  { %v2242_v35 = vpack.c.bf16 %v2397_v33, %v2396_v34 }
 0x1a5   :  { %v2755_v52 = vpop.permute.xlu0 %413 }
 0x1a6   :  { %2243 = vmatprep.subr.bf16.mxu1 %v2242_v35 }
 0x1a7   :  { %2245 = vmatpush3.bf16.msra.mxu1 %v2242_v35 }
 0x1a8   :  { %2247 = vmatprep.subr.bf16.mxu1 %v2246_v13 }
 0x1aa   :  { %2039 = vmatmul.mubr.msk.f32.vlgmr.msra.gmra.mrb[0].mxu1 %vm101_vm0, %v2718_v36 }
 0x1ab   :  { %2249 = vmatpush3.bf16.msra.mxu1 %v2246_v13  ;;  %2041 = vmatprep.mubr.msk.f32.mxu1 %vm101_vm0, %v2720_v37 }
 0x1ac   :  { %2251 = vmatprep.subr.bf16.mxu1 %v2250_v18 }
 0x1ae   :  { %2042 = vmatmul.mubr.msk.f32.gmra.mrb[2].mxu1 %vm101_vm0, %v2726_v38 }
 0x1af   :  { %2253 = vmatpush3.bf16.msra.mxu1 %v2250_v18  ;;  %2052 = vmatprep.mubr.msk.f32.mxu1 %vm101_vm0, %v2728_v39 }
 0x1b2   :  { %2053 = vmatmul.mubr.msk.f32.vlgmr.msra.gmra.mrb[0].mxu1 %vm101_vm0, %v2734_v40 }
 0x1b3   :  { %2055 = vmatprep.mubr.msk.f32.mxu1 %vm101_vm0, %v2736_v41 }
 0x1b6   :  { %2056 = vmatmul.mubr.msk.f32.gmra.mrb[2].mxu1 %vm101_vm0, %v2742_v42 }
 0x285   :  { %v2054_v48 = vpop.f32.mrb[0].mxu1 }
 0x286   :  { %v390_v49 = vpop.f32.mrb[1].mxu1  ;;  %v422_v51 = vsel %vm101_vm0, %v2054_v48, %v2748_v47  ;;  %v2270_v48 = vpack.c.bf16 %v634_v44, %v633_v43 }
 0x287   :  { %v421_v50 = vsel %vm101_vm0, %v390_v49, %v2746_v46  ;;  %v636_v49 = vld [vmem:[#allocation6 + $0xc8] sm:$0xff] }
 0x288   :  { %2074 = vmatprep.mubr.msk.f32.mxu0 %vm425_vm1, %v421_v50  ;;  %v2274_v50 = vpack.c.bf16 %v636_v49, %v635_v45  ;;  %2271 = vmatprep.subr.bf16.mxu1 %v2270_v48  ;;  %v631_v49 = vld [vmem:[#allocation6 + $0x100] sm:$0xff] }
 0x289   :  { %v2057_v54 = vpop.f32.mrb[2].mxu1  ;;  %2075 = vmatmul.mubr.msk.f32.vlgmr.msra.gmra.mrb[4].mxu0 %vm425_vm1, %v422_v51  ;;  %2273 = vmatpush3.bf16.msra.mxu1 %v2270_v48  ;;  %v630_v48 = vld [vmem:[#allocation6 + $0xf0] sm:$0xff] }
 0x28a   :  { %v400_v55 = vpop.f32.mrb[3].mxu1  ;;  %v424_v57 = vsel %vm101_vm0, %v2057_v54, %v2757_v53  ;;  %2275 = vmatprep.subr.bf16.mxu1 %v2274_v50 }
 0x28b   :  { %v423_v56 = vsel %vm101_vm0, %v400_v55, %v2755_v52 }
 0x28c   :  { %2077 = vmatprep.mubr.msk.f32.mxu0 %vm425_vm1, %v423_v56 }
 0x28d   :  { %2078 = vmatmul.mubr.msk.f32.gmra.mrb[6].mxu0 %vm425_vm1, %v424_v57  ;;  %2277 = vmatpush3.bf16.msra.mxu1 %v2274_v50  ;;  %v2306_v50 = vpack.c.bf16 %v631_v49, %v630_v48  ;;  %v1140_v48 = vld [vmem:[#allocation6 + $0x138] sm:$0xff]  ;;  %v1141_v49 = vld [vmem:[#allocation6 + $0x148] sm:$0xff] }
 0x28e   :  { %2102 = vmatprep.mubr.msk.f32.mxu0 %vm101_vm0, %v2708_v12 }
 0x35c   :  { %v2076_v59 = vpop.f32.mrb[4].mxu0 }
 0x35d   :  { %v510_v60 = vadd.f32 %v2076_v59, %v96_v58  ;;  %v504_v61 = vpop.f32.mrb[5].mxu0 }
 0x35e   :  { %v505_v62 = vadd.f32 %v504_v61, %v96_v58 }
 0x35f   :  { %553 = vrot.lane.b32.xlu1 %v510_v60, %s2605_s30  ;;  %v1850_v3 = vmul.f32 -1.442695, %v510_v60 }
 0x360   :  { %551 = vrot.lane.b32.xlu0 %v505_v62, %s2605_s30  ;;  %v2079_v63 = vpop.f32.mrb[6].mxu0  ;;  %v1849_v4 = vmul.f32 -1.442695, %v505_v62 }
 0x361   :  { %v520_v0 = vadd.f32 %v2079_v63, %v96_v58  ;;  %v514_v1 = vpop.f32.mrb[7].mxu0  ;;  %2428 = vpow2.f32 %v1850_v3 }
 0x362   :  { %v515_v2 = vadd.f32 %v514_v1, %v96_v58  ;;  %2430 = vpow2.f32 %v1849_v4 }
 0x363   :  { %557 = vrot.lane.b32.xlu1 %v520_v0, %s2605_s30  ;;  %v1852_v5 = vmul.f32 -1.442695, %v520_v0 }
 0x364   :  { %555 = vrot.lane.b32.xlu0 %v515_v2, %s2605_s30  ;;  %v1851_v6 = vmul.f32 -1.442695, %v515_v2 }
 0x365   :  { %2432 = vpow2.f32 %v1852_v5 }
 0x366   :  { %2434 = vpow2.f32 %v1851_v6 }
 0x36b   :  { %v2429_v7 = vpop.eup %2428 }
 0x36c   :  { %v2431_v8 = vpop.eup %2430  ;;  %v536_v9 = vadd.f32 1.0, %v2429_v7 }
 0x36d   :  { %v535_v11 = vadd.f32 1.0, %v2431_v8 }
 0x36e   :  { %2436 = vrcp.f32 %v536_v9 }
 0x36f   :  { %v2433_v10 = vpop.eup %2432  ;;  %2438 = vrcp.f32 %v535_v11 }
 0x370   :  { %v2435_v13 = vpop.eup %2434  ;;  %v538_v14 = vadd.f32 1.0, %v2433_v10 }
 0x371   :  { %v537_v15 = vadd.f32 1.0, %v2435_v13 }
 0x372   :  { %2440 = vrcp.f32 %v538_v14 }
 0x373   :  { %2442 = vrcp.f32 %v537_v15 }
 0x378   :  { %v2437_v16 = vpop.eup %2436 }
 0x379   :  { %v2439_v18 = vpop.eup %2438  ;;  %v592_v57 = vsub.f32 1.0, %v2437_v16 }
 0x37a   :  { %v591_v59 = vsub.f32 1.0, %v2439_v18  ;;  %v615_v63 = vmul.f32 %v2439_v18, %v2746_v46 }
 0x37c   :  { %v2441_v22 = vpop.eup %2440 }
 0x37d   :  { %v2443_v24 = vpop.eup %2442  ;;  %v618_v6 = vmul.f32 %v2441_v22, %v2757_v53 }
 0x37e   :  { %v593_v5 = vsub.f32 1.0, %v2443_v24 }
 0x3d1   :  { %v554_v17 = vpop.permute.xlu1 %553 }
 0x3d2   :  { %v564_v19 = vmul.f32 %v2437_v16, %v554_v17  ;;  %v552_v20 = vpop.permute.xlu0 %551 }
 0x3d3   :  { %v563_v21 = vmul.f32 %v2439_v18, %v552_v20 }
 0x3d4   :  { %573 = vrot.lane.b32.xlu1 %v564_v19, %s2606_s6 }
 0x3d5   :  { %v558_v23 = vpop.permute.xlu1 %557  ;;  %571 = vrot.lane.b32.xlu0 %v563_v21, %s2606_s6 }
 0x3d6   :  { %v566_v25 = vmul.f32 %v2441_v22, %v558_v23  ;;  %v556_v26 = vpop.permute.xlu0 %555  ;;  %v625_v23 = vld [vmem:[#allocation6 + $0xa0] sm:$0xff] }
 0x3d7   :  { %v565_v27 = vmul.f32 %v2443_v24, %v556_v26  ;;  %v627_v26 = vld [vmem:[#allocation6 + $0xc0] sm:$0xff] }
 0x3d8   :  { %577 = vrot.lane.b32.xlu1 %v566_v25, %s2606_s6 }
 0x3d9   :  { %575 = vrot.lane.b32.xlu0 %v565_v27, %s2606_s6 }
 0x446   :  { %v574_v28 = vpop.permute.xlu1 %573 }
 0x447   :  { %v584_v29 = vadd.f32 %v574_v28, %v510_v60  ;;  %v572_v30 = vpop.permute.xlu0 %571  ;;  %v616_v60 = vmul.f32 %v2437_v16, %v2748_v47  ;;  %v617_v47 = vmul.f32 %v2443_v24, %v2755_v52  ;;  %v626_v24 = vld [vmem:[#allocation6 + $0xb0] sm:$0xff] }
 0x448   :  { %v583_v31 = vadd.f32 %v572_v30, %v505_v62  ;;  %v2298_v27 = vpack.c.bf16 %v627_v26, %v626_v24  ;;  %v628_v28 = vld [vmem:[#allocation6 + $0xd0] sm:$0xff] }
 0x449   :  { %2444 = vtanh.f32 %v584_v29  ;;  %v629_v29 = vld [vmem:[#allocation6 + $0xe0] sm:$0xff] }
 0x44a   :  { %2446 = vtanh.f32 %v583_v31  ;;  %v578_v32 = vpop.permute.xlu1 %577  ;;  %v2302_v30 = vpack.c.bf16 %v629_v29, %v628_v28 }
 0x44b   :  { %v586_v33 = vadd.f32 %v578_v32, %v520_v0  ;;  %v576_v34 = vpop.permute.xlu0 %575 }
 0x44c   :  { %v585_v35 = vadd.f32 %v576_v34, %v515_v2  ;;  %v594_v2 = vsub.f32 1.0, %v2441_v22  ;;  %v624_v22 = vld [vmem:[#allocation6 + $0x90] sm:$0xff] }
 0x44d   :  { %2448 = vtanh.f32 %v586_v33  ;;  %v2294_v25 = vpack.c.bf16 %v625_v23, %v624_v22 }
 0x44e   :  { %2450 = vtanh.f32 %v585_v35 }
 0x44f   :  { %2295 = vmatprep.subr.bf16.mxu1 %v2294_v25 }
 0x453   :  { %v2445_v51 = vpop.eup %2444 }
 0x454   :  { %v2447_v54 = vpop.eup %2446  ;;  %601 = vrot.lane.b32.xlu1 %v2445_v51, %s2604_s4 }
 0x455   :  { %599 = vrot.lane.b32.xlu0 %v2447_v54, %s2604_s4 }
 0x457   :  { %v2449_v55 = vpop.eup %2448 }
 0x458   :  { %v2451_v56 = vpop.eup %2450  ;;  %605 = vrot.lane.b32.xlu1 %v2449_v55, %s2604_s4 }
 0x459   :  { %603 = vrot.lane.b32.xlu0 %v2451_v56, %s2604_s4 }
 0x4c6   :  { %v602_v58 = vpop.permute.xlu1 %601 }
 0x4c7   :  { %v612_v61 = vmul.f32 %v602_v58, %v592_v57  ;;  %v600_v62 = vpop.permute.xlu0 %599 }
 0x4c8   :  { %v611_v0 = vmul.f32 %v600_v62, %v591_v59 }
 0x4c9   :  { %v2782_v1 = vadd.f32 %v616_v60, %v612_v61  ;;  %v632_v61 = vld [vmem:[#allocation6 + $0x110] ss:$0 sm:$0xff] }
 0x4ca   :  { %v2784_v3 = vadd.f32 %v615_v63, %v611_v0  ;;  %v606_v4 = vpop.permute.xlu1 %605 }
 0x4cb   :  { %v614_v7 = vmul.f32 %v606_v4, %v594_v2  ;;  %643 = vrot.lane.b32.xlu1 %v2782_v1, %s2604_s4  ;;  %v604_v8 = vpop.permute.xlu0 %603 }
 0x4cc   :  { %v613_v9 = vmul.f32 %v604_v8, %v593_v5  ;;  %641 = vrot.lane.b32.xlu0 %v2784_v3, %s2604_s4 }
 0x4cd   :  { %v2792_v46 = vadd.f32 %v618_v6, %v614_v7 }
 0x4ce   :  { %v2794_v10 = vadd.f32 %v617_v47, %v613_v9 }
 0x4cf   :  { %647 = vrot.lane.b32.xlu1 %v2792_v46, %s2604_s4 }
 0x4d0   :  { %645 = vrot.lane.b32.xlu0 %v2794_v10, %s2604_s4 }
 0x53d   :  { %v644_v53 = vpop.permute.xlu1 %643 }
 0x53e   :  { %v642_v11 = vpop.permute.xlu0 %641 }
 0x53f   :  { %2088 = vmatprep.mubr.msk.f32.mxu1 %vm101_vm0, %v642_v11 }
 0x540   :  { %2089 = vmatmul.mubr.msk.f32.vlgmr.msra.gmra.mrb[4].mxu1 %vm101_vm0, %v644_v53 }
 0x541   :  { %v648_v13 = vpop.permute.xlu1 %647  ;;  %2297 = vmatpush3.bf16.msra.mxu1 %v2294_v25 }
 0x542   :  { %v646_v52 = vpop.permute.xlu0 %645  ;;  %2299 = vmatprep.subr.bf16.mxu1 %v2298_v27 }
 0x543   :  { %2091 = vmatprep.mubr.msk.f32.mxu1 %vm101_vm0, %v646_v52 }
 0x544   :  { %2092 = vmatmul.mubr.msk.f32.gmra.mrb[6].mxu1 %vm101_vm0, %v648_v13 }
 0x545   :  { %2301 = vmatpush3.bf16.msra.mxu1 %v2298_v27 }
 0x546   :  { %2303 = vmatprep.subr.bf16.mxu1 %v2302_v30 }
 0x549   :  { %2305 = vmatpush3.bf16.msra.mxu1 %v2302_v30 }
 0x54a   :  { %2307 = vmatprep.subr.bf16.mxu1 %v2306_v50 }
 0x54d   :  { %2309 = vmatpush3.bf16.msra.mxu1 %v2306_v50 }
 0x613   :  { %v2090_v14 = vpop.f32.mrb[4].mxu1 }
 0x614   :  { %v723_v15 = vpop.f32.mrb[5].mxu1 }
 0x615   :  { %v2398_v16 = vpack.i.bf16 %v2090_v14, %v723_v15  ;;  %v2286_v17 = vpack.c.bf16 %v2090_v14, %v723_v15 }
 0x617   :  { %2399 = vrot.lane.b32.xlu0 %v2398_v16, %s2604_s4  ;;  %v2093_v18 = vpop.f32.mrb[6].mxu1 }
 0x618   :  { %v733_v19 = vpop.f32.mrb[7].mxu1 }
 0x619   :  { %v2403_v20 = vpack.i.bf16 %v2093_v18, %v733_v19  ;;  %v2290_v21 = vpack.c.bf16 %v2093_v18, %v733_v19 }
 0x61b   :  { %2404 = vrot.lane.b32.xlu1 %v2403_v20, %s2604_s4 }
 0x689   :  { %v2400_v31 = vpop.permute.xlu0 %2399 }
 0x68a   :  { %v2402_v32 = vunpack.i.h.bf16 %v2400_v31  ;;  %v2401_v33 = vunpack.i.l.bf16 %v2400_v31 }
 0x68c   :  { %v2278_v34 = vpack.c.bf16 %v2402_v32, %v2401_v33 }
 0x68d   :  { %v2405_v35 = vpop.permute.xlu1 %2404 }
 0x68e   :  { %v2407_v43 = vunpack.i.h.bf16 %v2405_v35  ;;  %v2406_v44 = vunpack.i.l.bf16 %v2405_v35  ;;  %2279 = vmatprep.subr.bf16.mxu0 %v2278_v34 }
 0x68f   :  { %2281 = vmatpush3.bf16.msra.mxu0 %v2278_v34 }
 0x690   :  { %v2282_v45 = vpack.c.bf16 %v2407_v43, %v2406_v44 }
 0x692   :  { %2283 = vmatprep.subr.bf16.mxu0 %v2282_v45 }
 0x693   :  { %2285 = vmatpush3.bf16.msra.mxu0 %v2282_v45  ;;  %v1139_v45 = vld [vmem:[#allocation6 + $0x128] sm:$0xff] }
 0x694   :  { %2287 = vmatprep.subr.bf16.mxu0 %v2286_v17  ;;  %v2310_v50 = vpack.c.bf16 %v1140_v48, %v1139_v45 }
 0x696   :  { %2103 = vmatmul.mubr.msk.f32.vlgmr.msra.gmra.mrb[8].mxu0 %vm101_vm0, %v2718_v36 }
 0x697   :  { %2289 = vmatpush3.bf16.msra.mxu0 %v2286_v17  ;;  %2105 = vmatprep.mubr.msk.f32.mxu0 %vm101_vm0, %v2720_v37 }
 0x698   :  { %2291 = vmatprep.subr.bf16.mxu0 %v2290_v21 }
 0x69a   :  { %2106 = vmatmul.mubr.msk.f32.gmra.mrb[10].mxu0 %vm101_vm0, %v2726_v38 }
 0x69b   :  { %2293 = vmatpush3.bf16.msra.mxu0 %v2290_v21  ;;  %2116 = vmatprep.mubr.msk.f32.mxu0 %vm101_vm0, %v2728_v39 }
 0x69c   :  { %2311 = vmatprep.subr.bf16.mxu0 %v2310_v50 }
 0x69e   :  { %2117 = vmatmul.mubr.msk.f32.vlgmr.msra.gmra.mrb[8].mxu0 %vm101_vm0, %v2734_v40 }
 0x69f   :  { %2119 = vmatprep.mubr.msk.f32.mxu0 %vm101_vm0, %v2736_v41  ;;  %2313 = vmatpush3.bf16.msra.mxu0 %v2310_v50 }
 0x6a2   :  { %2120 = vmatmul.mubr.msk.f32.gmra.mrb[10].mxu0 %vm101_vm0, %v2742_v42 }
 0x771   :  { %v2118_v51 = vpop.f32.mrb[8].mxu0 }
 0x772   :  { %v909_v54 = vpop.f32.mrb[9].mxu0  ;;  %v929_v56 = vsel %vm101_vm0, %v2118_v51, %v2782_v1  ;;  %v1142_v51 = vld [vmem:[#allocation6 + $0x158] sm:$0xff] }
 0x773   :  { %v928_v55 = vsel %vm101_vm0, %v909_v54, %v2784_v3  ;;  %v2314_v54 = vpack.c.bf16 %v1142_v51, %v1141_v49  ;;  %v1137_v49 = vld [vmem:[#allocation6 + $0x190] sm:$0xff] }
 0x774   :  { %2138 = vmatprep.mubr.msk.f32.mxu1 %vm425_vm1, %v928_v55 }
 0x775   :  { %v2121_v57 = vpop.f32.mrb[10].mxu0  ;;  %2139 = vmatmul.mubr.msk.f32.vlgmr.msra.gmra.mrb[8].mxu1 %vm425_vm1, %v929_v56  ;;  %2315 = vmatprep.subr.bf16.mxu0 %v2314_v54 }
 0x776   :  { %v919_v58 = vpop.f32.mrb[11].mxu0  ;;  %v931_v60 = vsel %vm101_vm0, %v2121_v57, %v2792_v46  ;;  %2317 = vmatpush3.bf16.msra.mxu0 %v2314_v54 }
 0x777   :  { %v930_v59 = vsel %vm101_vm0, %v919_v58, %v2794_v10 }
 0x778   :  { %2141 = vmatprep.mubr.msk.f32.mxu1 %vm425_vm1, %v930_v59 }
 0x779   :  { %2142 = vmatmul.mubr.msk.f32.gmra.mrb[10].mxu1 %vm425_vm1, %v931_v60 }
 0x77a   :  { %2166 = vmatprep.mubr.msk.f32.mxu1 %vm101_vm0, %v2708_v12 }
 0x848   :  { %v2140_v62 = vpop.f32.mrb[8].mxu1 }
 0x849   :  { %v1016_v63 = vadd.f32 %v2140_v62, %v632_v61  ;;  %v1010_v0 = vpop.f32.mrb[9].mxu1 }
 0x84a   :  { %v1011_v2 = vadd.f32 %v1010_v0, %v632_v61 }
 0x84b   :  { %1059 = vrot.lane.b32.xlu1 %v1016_v63, %s2605_s30  ;;  %v1870_v8 = vmul.f32 -1.442695, %v1016_v63 }
 0x84c   :  { %1057 = vrot.lane.b32.xlu0 %v1011_v2, %s2605_s30  ;;  %v2143_v4 = vpop.f32.mrb[10].mxu1  ;;  %v1869_v47 = vmul.f32 -1.442695, %v1011_v2 }
 0x84d   :  { %v1026_v5 = vadd.f32 %v2143_v4, %v632_v61  ;;  %v1020_v6 = vpop.f32.mrb[11].mxu1  ;;  %2452 = vpow2.f32 %v1870_v8 }
 0x84e   :  { %v1021_v7 = vadd.f32 %v1020_v6, %v632_v61  ;;  %2454 = vpow2.f32 %v1869_v47 }
 0x84f   :  { %1063 = vrot.lane.b32.xlu1 %v1026_v5, %s2605_s30  ;;  %v1872_v12 = vmul.f32 -1.442695, %v1026_v5 }
 0x850   :  { %1061 = vrot.lane.b32.xlu0 %v1021_v7, %s2605_s30  ;;  %v1871_v9 = vmul.f32 -1.442695, %v1021_v7 }
 0x851   :  { %2456 = vpow2.f32 %v1872_v12 }
 0x852   :  { %2458 = vpow2.f32 %v1871_v9 }
 0x857   :  { %v2453_v53 = vpop.eup %2452 }
 0x858   :  { %v2455_v11 = vpop.eup %2454  ;;  %v1042_v52 = vadd.f32 1.0, %v2453_v53 }
 0x859   :  { %v1041_v14 = vadd.f32 1.0, %v2455_v11 }
 0x85a   :  { %2460 = vrcp.f32 %v1042_v52 }
 0x85b   :  { %v2457_v13 = vpop.eup %2456  ;;  %2462 = vrcp.f32 %v1041_v14 }
 0x85c   :  { %v2459_v15 = vpop.eup %2458  ;;  %v1044_v16 = vadd.f32 1.0, %v2457_v13 }
 0x85d   :  { %v1043_v17 = vadd.f32 1.0, %v2459_v15 }
 0x85e   :  { %2464 = vrcp.f32 %v1044_v16 }
 0x85f   :  { %2466 = vrcp.f32 %v1043_v17 }
 0x864   :  { %v2461_v18 = vpop.eup %2460 }
 0x865   :  { %v2463_v20 = vpop.eup %2462  ;;  %v1098_v59 = vsub.f32 1.0, %v2461_v18  ;;  %v1122_v62 = vmul.f32 %v2461_v18, %v2782_v1 }
 0x866   :  { %v1097_v61 = vsub.f32 1.0, %v2463_v20 }
 0x868   :  { %v2465_v24 = vpop.eup %2464 }
 0x869   :  { %v2467_v26 = vpop.eup %2466  ;;  %v1100_v6 = vsub.f32 1.0, %v2465_v24  ;;  %v1124_v12 = vmul.f32 %v2465_v24, %v2792_v46 }
 0x86a   :  { %v1099_v47 = vsub.f32 1.0, %v2467_v26  ;;  %v1123_v1 = vmul.f32 %v2467_v26, %v2794_v10 }
 0x8bd   :  { %v1060_v19 = vpop.permute.xlu1 %1059 }
 0x8be   :  { %v1070_v21 = vmul.f32 %v2461_v18, %v1060_v19  ;;  %v1058_v22 = vpop.permute.xlu0 %1057 }
 0x8bf   :  { %v1069_v23 = vmul.f32 %v2463_v20, %v1058_v22 }
 0x8c0   :  { %1079 = vrot.lane.b32.xlu1 %v1070_v21, %s2606_s6 }
 0x8c1   :  { %v1064_v25 = vpop.permute.xlu1 %1063  ;;  %1077 = vrot.lane.b32.xlu0 %v1069_v23, %s2606_s6  ;;  %v1130_v23 = vld [vmem:[#allocation6 + $0x120] sm:$0xff] }
 0x8c2   :  { %v1072_v27 = vmul.f32 %v2465_v24, %v1064_v25  ;;  %v1062_v28 = vpop.permute.xlu0 %1061  ;;  %v1131_v24 = vld [vmem:[#allocation6 + $0x130] sm:$0xff]  ;;  %v1132_v25 = vld [vmem:[#allocation6 + $0x140] sm:$0xff] }
 0x8c3   :  { %v1071_v29 = vmul.f32 %v2467_v26, %v1062_v28  ;;  %v2334_v26 = vpack.c.bf16 %v1131_v24, %v1130_v23 }
 0x8c4   :  { %1083 = vrot.lane.b32.xlu1 %v1072_v27, %s2606_s6  ;;  %v1133_v27 = vld [vmem:[#allocation6 + $0x150] sm:$0xff] }
 0x8c5   :  { %1081 = vrot.lane.b32.xlu0 %v1071_v29, %s2606_s6  ;;  %v2338_v28 = vpack.c.bf16 %v1133_v27, %v1132_v25  ;;  %v1134_v29 = vld [vmem:[#allocation6 + $0x160] sm:$0xff]  ;;  %2335 = vmatprep.subr.bf16.mxu0 %v2334_v26 }
 0x932   :  { %v1080_v30 = vpop.permute.xlu1 %1079 }
 0x933   :  { %v1090_v31 = vadd.f32 %v1080_v30, %v1016_v63  ;;  %v1078_v32 = vpop.permute.xlu0 %1077  ;;  %v1135_v30 = vld [vmem:[#allocation6 + $0x170] sm:$0xff] }
 0x934   :  { %v1089_v33 = vadd.f32 %v1078_v32, %v1011_v2  ;;  %v1121_v2 = vmul.f32 %v2463_v20, %v2784_v3 }
 0x935   :  { %2468 = vtanh.f32 %v1090_v31  ;;  %v2342_v31 = vpack.c.bf16 %v1135_v30, %v1134_v29 }
 0x936   :  { %2470 = vtanh.f32 %v1089_v33  ;;  %v1084_v34 = vpop.permute.xlu1 %1083 }
 0x937   :  { %v1092_v35 = vadd.f32 %v1084_v34, %v1026_v5  ;;  %v1082_v43 = vpop.permute.xlu0 %1081 }
 0x938   :  { %v1091_v44 = vadd.f32 %v1082_v43, %v1021_v7 }
 0x939   :  { %2472 = vtanh.f32 %v1092_v35 }
 0x93a   :  { %2474 = vtanh.f32 %v1091_v44 }
 0x93f   :  { %v2469_v55 = vpop.eup %2468 }
 0x940   :  { %v2471_v56 = vpop.eup %2470  ;;  %1107 = vrot.lane.b32.xlu1 %v2469_v55, %s2604_s4  ;;  %v1138_v55 = vld [vmem:[#allocation6 + $0x1a0] ss:$0 sm:$0xff] }
 0x941   :  { %1105 = vrot.lane.b32.xlu0 %v2471_v56, %s2604_s4 }
 0x943   :  { %v2473_v57 = vpop.eup %2472 }
 0x944   :  { %v2475_v58 = vpop.eup %2474  ;;  %1111 = vrot.lane.b32.xlu1 %v2473_v57, %s2604_s4 }
 0x945   :  { %1109 = vrot.lane.b32.xlu0 %v2475_v58, %s2604_s4 }
 0x9b2   :  { %v1108_v60 = vpop.permute.xlu1 %1107 }
 0x9b3   :  { %v1118_v63 = vmul.f32 %v1108_v60, %v1098_v59  ;;  %v1106_v0 = vpop.permute.xlu0 %1105 }
 0x9b4   :  { %v1117_v4 = vmul.f32 %v1106_v0, %v1097_v61 }
 0x9b5   :  { %v2848_v5 = vadd.f32 %v1122_v62, %v1118_v63 }
 0x9b6   :  { %v2850_v7 = vadd.f32 %v1121_v2, %v1117_v4  ;;  %v1112_v8 = vpop.permute.xlu1 %1111 }
 0x9b7   :  { %v1120_v9 = vmul.f32 %v1112_v8, %v1100_v6  ;;  %1149 = vrot.lane.b32.xlu1 %v2848_v5, %s2604_s4  ;;  %v1110_v53 = vpop.permute.xlu0 %1109 }
 0x9b8   :  { %v1119_v11 = vmul.f32 %v1110_v53, %v1099_v47  ;;  %1147 = vrot.lane.b32.xlu0 %v2850_v7, %s2604_s4 }
 0x9b9   :  { %v2858_v3 = vadd.f32 %v1124_v12, %v1120_v9 }
 0x9ba   :  { %v2860_v52 = vadd.f32 %v1123_v1, %v1119_v11 }
 0x9bb   :  { %1153 = vrot.lane.b32.xlu1 %v2858_v3, %s2604_s4 }
 0x9bc   :  { %1151 = vrot.lane.b32.xlu0 %v2860_v52, %s2604_s4 }
 0xa29   :  { %v1150_v46 = vpop.permute.xlu1 %1149 }
 0xa2a   :  { %v1148_v13 = vpop.permute.xlu0 %1147 }
 0xa2b   :  { %2152 = vmatprep.mubr.msk.f32.mxu0 %vm101_vm0, %v1148_v13 }
 0xa2c   :  { %2153 = vmatmul.mubr.msk.f32.vlgmr.msra.gmra.mrb[12].mxu0 %vm101_vm0, %v1150_v46 }
 0xa2d   :  { %v1154_v14 = vpop.permute.xlu1 %1153  ;;  %2337 = vmatpush3.bf16.msra.mxu0 %v2334_v26 }
 0xa2e   :  { %v1152_v10 = vpop.permute.xlu0 %1151  ;;  %2339 = vmatprep.subr.bf16.mxu0 %v2338_v28 }
 0xa2f   :  { %2155 = vmatprep.mubr.msk.f32.mxu0 %vm101_vm0, %v1152_v10 }
 0xa30   :  { %2156 = vmatmul.mubr.msk.f32.gmra.mrb[14].mxu0 %vm101_vm0, %v1154_v14 }
 0xa31   :  { %2341 = vmatpush3.bf16.msra.mxu0 %v2338_v28 }
 0xa32   :  { %2343 = vmatprep.subr.bf16.mxu0 %v2342_v31 }
 0xa35   :  { %2345 = vmatpush3.bf16.msra.mxu0 %v2342_v31 }
 0xaff   :  { %v2154_v15 = vpop.f32.mrb[12].mxu0 }
 0xb00   :  { %v1229_v16 = vpop.f32.mrb[13].mxu0 }
 0xb01   :  { %v2408_v17 = vpack.i.bf16 %v2154_v15, %v1229_v16  ;;  %v2326_v18 = vpack.c.bf16 %v2154_v15, %v1229_v16 }
 0xb03   :  { %2409 = vrot.lane.b32.xlu0 %v2408_v17, %s2604_s4  ;;  %v2157_v19 = vpop.f32.mrb[14].mxu0 }
 0xb04   :  { %v1239_v20 = vpop.f32.mrb[15].mxu0 }
 0xb05   :  { %v2413_v21 = vpack.i.bf16 %v2157_v19, %v1239_v20  ;;  %v2330_v22 = vpack.c.bf16 %v2157_v19, %v1239_v20 }
 0xb07   :  { %2414 = vrot.lane.b32.xlu1 %v2413_v21, %s2604_s4 }
 0xb75   :  { %v2410_v32 = vpop.permute.xlu0 %2409 }
 0xb76   :  { %v2412_v33 = vunpack.i.h.bf16 %v2410_v32  ;;  %v2411_v34 = vunpack.i.l.bf16 %v2410_v32 }
 0xb78   :  { %v2318_v35 = vpack.c.bf16 %v2412_v33, %v2411_v34 }
 0xb79   :  { %v2415_v43 = vpop.permute.xlu1 %2414 }
 0xb7a   :  { %v2417_v44 = vunpack.i.h.bf16 %v2415_v43  ;;  %v2416_v45 = vunpack.i.l.bf16 %v2415_v43  ;;  %2319 = vmatprep.subr.bf16.mxu1 %v2318_v35  ;;  %v2607_v43 = vmov 0.0|0.0  }
 0xb7b   :  { %2321 = vmatpush3.bf16.msra.mxu1 %v2318_v35 }
 0xb7c   :  { %v2322_v48 = vpack.c.bf16 %v2417_v44, %v2416_v45 }
 0xb7e   :  { %2323 = vmatprep.subr.bf16.mxu1 %v2322_v48 }
 0xb7f   :  { %2325 = vmatpush3.bf16.msra.mxu1 %v2322_v48 }
 0xb80   :  { %2327 = vmatprep.subr.bf16.mxu1 %v2326_v18 }
 0xb82   :  { %2167 = vmatmul.mubr.msk.f32.vlgmr.msra.gmra.mrb[12].mxu1 %vm101_vm0, %v2718_v36  ;;  %v1136_v36 = vld [vmem:[#allocation6 + $0x180] sm:$0xff] }
 0xb83   :  { %2329 = vmatpush3.bf16.msra.mxu1 %v2326_v18  ;;  %2169 = vmatprep.mubr.msk.f32.mxu1 %vm101_vm0, %v2720_v37  ;;  %v2346_v37 = vpack.c.bf16 %v1137_v49, %v1136_v36 }
 0xb84   :  { %2331 = vmatprep.subr.bf16.mxu1 %v2330_v22 }
 0xb85   :  { %2347 = vmatprep.subr.bf16.mxu0 %v2346_v37 }
 0xb86   :  { %2170 = vmatmul.mubr.msk.f32.gmra.mrb[14].mxu1 %vm101_vm0, %v2726_v38  ;;  %2349 = vmatpush3.bf16.msra.mxu0 %v2346_v37 }
 0xb87   :  { %2333 = vmatpush3.bf16.msra.mxu1 %v2330_v22  ;;  %2180 = vmatprep.mubr.msk.f32.mxu1 %vm101_vm0, %v2728_v39 }
 0xb88   :  { %2350 = vmatprep.subr.bf16.mxu1 %v2607_v43  ;;  %2356 = vmatprep.subr.bf16.mxu0 %v2607_v43 }
 0xb8a   :  { %2181 = vmatmul.mubr.msk.f32.vlgmr.msra.gmra.mrb[12].mxu1 %vm101_vm0, %v2734_v40 }
 0xb8b   :  { %2183 = vmatprep.mubr.msk.f32.mxu1 %vm101_vm0, %v2736_v41 }
 0xb8e   :  { %2184 = vmatmul.mubr.msk.f32.gmra.mrb[14].mxu1 %vm101_vm0, %v2742_v42 }
 0xc5d   :  { %v2182_v50 = vpop.f32.mrb[12].mxu1 }
 0xc5e   :  { %v1415_v38 = vpop.f32.mrb[13].mxu1  ;;  %v1435_v39 = vsel %vm101_vm0, %v2182_v50, %v2848_v5 }
 0xc5f   :  { %v1434_v51 = vsel %vm101_vm0, %v1415_v38, %v2850_v7 }
 0xc60   :  { %2202 = vmatprep.mubr.msk.f32.mxu0 %vm425_vm1, %v1434_v51 }
 0xc61   :  { %v2185_v40 = vpop.f32.mrb[14].mxu1  ;;  %2203 = vmatmul.mubr.msk.f32.vlgmr.msra.gmra.mrb[16].mxu0 %vm425_vm1, %v1435_v39 }
 0xc62   :  { %v1425_v41 = vpop.f32.mrb[15].mxu1  ;;  %v1437_v54 = vsel %vm101_vm0, %v2185_v40, %v2858_v3 }
 0xc63   :  { %v1436_v42 = vsel %vm101_vm0, %v1425_v41, %v2860_v52 }
 0xc64   :  { %2205 = vmatprep.mubr.msk.f32.mxu0 %vm425_vm1, %v1436_v42 }
 0xc65   :  { %2206 = vmatmul.mubr.msk.f32.gmra.mrb[18].mxu0 %vm425_vm1, %v1437_v54  ;;  %v2609_v54 = vmov 0.0  }
 0xc66   :  { %2216 = vmatprep.mubr.msk.f32.mxu1 %vm2608_vm2, %v2609_v54  ;;  %2227 = vmatprep.mubr.msk.f32.mxu0 %vm2608_vm2, %v2609_v54 }
 0xd34   :  { %v2204_v56 = vpop.f32.mrb[16].mxu0 }
 0xd35   :  { %v1522_v57 = vadd.f32 %v2204_v56, %v1138_v55  ;;  %v1516_v58 = vpop.f32.mrb[17].mxu0 }
 0xd36   :  { %v1517_v59 = vadd.f32 %v1516_v58, %v1138_v55 }
 0xd37   :  { %1565 = vrot.lane.b32.xlu1 %v1522_v57, %s2605_s30  ;;  %v1890_v0 = vmul.f32 -1.442695, %v1522_v57 }
 0xd38   :  { %1563 = vrot.lane.b32.xlu0 %v1517_v59, %s2605_s30  ;;  %v2207_v60 = vpop.f32.mrb[18].mxu0  ;;  %v1889_v2 = vmul.f32 -1.442695, %v1517_v59 }
 0xd39   :  { %v1532_v61 = vadd.f32 %v2207_v60, %v1138_v55  ;;  %v1526_v62 = vpop.f32.mrb[19].mxu0  ;;  %2476 = vpow2.f32 %v1890_v0  ;;  %v1725_v60 = vld [vmem:[#allocation7] sm:$0xff]  ;;  %v1728_v0 = vld [vmem:[#allocation7 + $0x18] sm:$0xff] }
 0xd3a   :  { %v1527_v63 = vadd.f32 %v1526_v62, %v1138_v55  ;;  %2478 = vpow2.f32 %v1889_v2 }
 0xd3b   :  { %1569 = vrot.lane.b32.xlu1 %v1532_v61, %s2605_s30  ;;  %v1892_v4 = vmul.f32 -1.442695, %v1532_v61 }
 0xd3c   :  { %1567 = vrot.lane.b32.xlu0 %v1527_v63, %s2605_s30  ;;  %v1891_v6 = vmul.f32 -1.442695, %v1527_v63 }
 0xd3d   :  { %2480 = vpow2.f32 %v1892_v4 }
 0xd3e   :  { %2482 = vpow2.f32 %v1891_v6 }
 0xd43   :  { %v2477_v8 = vpop.eup %2476 }
 0xd44   :  { %v2479_v47 = vpop.eup %2478  ;;  %v1548_v12 = vadd.f32 1.0, %v2477_v8 }
 0xd45   :  { %v1547_v53 = vadd.f32 1.0, %v2479_v47 }
 0xd46   :  { %2484 = vrcp.f32 %v1548_v12 }
 0xd47   :  { %v2481_v9 = vpop.eup %2480  ;;  %2486 = vrcp.f32 %v1547_v53 }
 0xd48   :  { %v2483_v1 = vpop.eup %2482  ;;  %v1550_v11 = vadd.f32 1.0, %v2481_v9 }
 0xd49   :  { %v1549_v46 = vadd.f32 1.0, %v2483_v1 }
 0xd4a   :  { %2488 = vrcp.f32 %v1550_v11  ;;  %v1635_v11 = vld [vmem:[%s2925_s1] sm:$0x3] }
 0xd4b   :  { %2490 = vrcp.f32 %v1549_v46 }
 0xd50   :  { %v2485_v13 = vpop.eup %2484 }
 0xd51   :  { %v2487_v14 = vpop.eup %2486  ;;  %v1604_v44 = vsub.f32 1.0, %v2485_v13  ;;  %v1628_v36 = vmul.f32 %v2485_v13, %v2848_v5 }
 0xd52   :  { %v1603_v48 = vsub.f32 1.0, %v2487_v14  ;;  %v1627_v50 = vmul.f32 %v2487_v14, %v2850_v7  ;;  %v1726_v7 = vld [vmem:[#allocation7 + $0x8] sm:$0xff] }
 0xd54   :  { %v2489_v18 = vpop.eup %2488 }
 0xd55   :  { %v2491_v20 = vpop.eup %2490  ;;  %v1606_v39 = vsub.f32 1.0, %v2489_v18  ;;  %v1630_v55 = vmul.f32 %v2489_v18, %v2858_v3 }
 0xd56   :  { %v1605_v42 = vsub.f32 1.0, %v2491_v20  ;;  %v1629_v5 = vmul.f32 %v2491_v20, %v2860_v52 }
 0xda9   :  { %v1566_v10 = vpop.permute.xlu1 %1565 }
 0xdaa   :  { %v1576_v15 = vmul.f32 %v2485_v13, %v1566_v10  ;;  %v1564_v16 = vpop.permute.xlu0 %1563  ;;  %v1894_v10 = vld [vmem:[#allocation7 + $0x20] ss:$0 sm:$0xff] }
 0xdab   :  { %v1575_v17 = vmul.f32 %v2487_v14, %v1564_v16 }
 0xdac   :  { %1585 = vrot.lane.b32.xlu1 %v1576_v15, %s2606_s6 }
 0xdad   :  { %v1570_v19 = vpop.permute.xlu1 %1569  ;;  %1583 = vrot.lane.b32.xlu0 %v1575_v17, %s2606_s6  ;;  %v1896_v17 = vld [vmem:[#allocation7 + $0x28] ss:$0 sm:$0xff] }
 0xdae   :  { %v1578_v21 = vmul.f32 %v2489_v18, %v1570_v19  ;;  %v1568_v22 = vpop.permute.xlu0 %1567 }
 0xdaf   :  { %v1577_v23 = vmul.f32 %v2491_v20, %v1568_v22 }
 0xdb0   :  { %1589 = vrot.lane.b32.xlu1 %v1578_v21, %s2606_s6  ;;  %v1897_v21 = vld [vmem:[#allocation7 + $0x30] ss:$0 sm:$0xff] }
 0xdb1   :  { %1587 = vrot.lane.b32.xlu0 %v1577_v23, %s2606_s6 }
 0xe1e   :  { %v1586_v24 = vpop.permute.xlu1 %1585 }
 0xe1f   :  { %v1596_v25 = vadd.f32 %v1586_v24, %v1522_v57  ;;  %v1584_v26 = vpop.permute.xlu0 %1583 }
 0xe20   :  { %v1595_v27 = vadd.f32 %v1584_v26, %v1517_v59 }
 0xe21   :  { %2492 = vtanh.f32 %v1596_v25 }
 0xe22   :  { %2494 = vtanh.f32 %v1595_v27  ;;  %v1590_v28 = vpop.permute.xlu1 %1589 }
 0xe23   :  { %v1598_v29 = vadd.f32 %v1590_v28, %v1532_v61  ;;  %v1588_v30 = vpop.permute.xlu0 %1587  ;;  %v1727_v61 = vld [vmem:[#allocation7 + $0x10] sm:$0xff] }
 0xe24   :  { %v1597_v31 = vadd.f32 %v1588_v30, %v1527_v63  ;;  %v2357_v63 = vpack.c.bf16 %v1726_v7, %v1725_v60  ;;  %v2360_v4 = vpack.c.bf16 %v1728_v0, %v1727_v61 }
 0xe25   :  { %2496 = vtanh.f32 %v1598_v29 }
 0xe26   :  { %2498 = vtanh.f32 %v1597_v31  ;;  %2358 = vmatpush3.bf16.msra.mxu0 %v2357_v63 }
 0xe27   :  { %2359 = vmatprep.subr.bf16.mxu0 %v2607_v43 }
 0xe2a   :  { %2361 = vmatpush3.bf16.msra.mxu0 %v2360_v4 }
 0xe2b   :  { %v2493_v32 = vpop.eup %2492 }
 0xe2c   :  { %v2495_v33 = vpop.eup %2494  ;;  %1613 = vrot.lane.b32.xlu1 %v2493_v32, %s2604_s4 }
 0xe2d   :  { %1611 = vrot.lane.b32.xlu0 %v2495_v33, %s2604_s4 }
 0xe2f   :  { %v2497_v34 = vpop.eup %2496 }
 0xe30   :  { %v2499_v35 = vpop.eup %2498  ;;  %1617 = vrot.lane.b32.xlu1 %v2497_v34, %s2604_s4 }
 0xe31   :  { %1615 = vrot.lane.b32.xlu0 %v2499_v35, %s2604_s4 }
 0xe9e   :  { %v1614_v45 = vpop.permute.xlu1 %1613 }
 0xe9f   :  { %v1624_v49 = vmul.f32 %v1614_v45, %v1604_v44  ;;  %v1612_v37 = vpop.permute.xlu0 %1611 }
 0xea0   :  { %v1623_v38 = vmul.f32 %v1612_v37, %v1603_v48 }
 0xea1   :  { %v1632_v51 = vadd.f32 %v1628_v36, %v1624_v49 }
 0xea2   :  { %v1631_v40 = vadd.f32 %v1627_v50, %v1623_v38  ;;  %v1618_v41 = vpop.permute.xlu1 %1617 }
 0xea3   :  { %v1626_v56 = vmul.f32 %v1618_v41, %v1606_v39  ;;  %v1616_v57 = vpop.permute.xlu0 %1615 }
 0xea4   :  { %v1625_v58 = vmul.f32 %v1616_v57, %v1605_v42  ;;  %v2418_v59 = vpack.i.bf16 %v1632_v51, %v1631_v40 }
 0xea5   :  { %v1634_v62 = vadd.f32 %v1630_v55, %v1626_v56 }
 0xea6   :  { %v1633_v2 = vadd.f32 %v1629_v5, %v1625_v58  ;;  %2419 = vrot.lane.b32.xlu0 %v2418_v59, %s2604_s4 }
 0xea8   :  { %v2423_v6 = vpack.i.bf16 %v1634_v62, %v1633_v2 }
 0xeaa   :  { %2424 = vrot.lane.b32.xlu1 %v2423_v6, %s2604_s4 }
 0xf18   :  { %v2420_v3 = vpop.permute.xlu0 %2419 }
 0xf19   :  { %v2422_v52 = vunpack.i.h.bf16 %v2420_v3  ;;  %v2421_v8 = vunpack.i.l.bf16 %v2420_v3 }
 0xf1b   :  { %v2351_v47 = vpack.c.bf16 %v2422_v52, %v2421_v8 }
 0xf1c   :  { %v2425_v12 = vpop.permute.xlu1 %2424 }
 0xf1d   :  { %v2427_v9 = vunpack.i.h.bf16 %v2425_v12  ;;  %v2426_v53 = vunpack.i.l.bf16 %v2425_v12  ;;  %2352 = vmatpush3.bf16.msra.mxu1 %v2351_v47 }
 0xf1e   :  { %2353 = vmatprep.subr.bf16.mxu1 %v2607_v43 }
 0xf1f   :  { %v2354_v1 = vpack.c.bf16 %v2427_v9, %v2426_v53 }
 0xf21   :  { %2355 = vmatpush3.bf16.msra.mxu1 %v2354_v1 }
 0xf24   :  { %2217 = vmatmul.mubr.msk.f32.vlgmr.msra.gmra.mrb[16].mxu1 %vm101_vm0, %v1635_v11 }
 0xff7   :  { %v1721_v46 = vpop.f32.mrb[16].mxu1 }
 0xff8   :  { %v2218_v13 = vpop.f32.mrb[17].mxu1  ;;  %2228 = vmatmul.mubr.msk.f32.vlgmr.msra.gmra.mrb[20].mxu0 %vm101_vm0, %v1721_v46 }
0x10cb   :  { %v1805_v14 = vpop.f32.mrb[20].mxu0 }
0x10cc   :  { %v1806_v15 = vadd.f32 %v1894_v10, %v1805_v14  ;;  %v2229_v16 = vpop.f32.mrb[21].mxu0 }
0x10ce   :  { %2500 = vtanh.f32 %v1806_v15 }
0x10d8   :  { %v2501_v18 = vpop.eup %2500 }
0x10d9   :  { %v1814_v19 = vmul.f32 %v2501_v18, %v1896_v17 }
0x10db   :  { %v1816_v20 = vsel %vm1815_vm3, %v1814_v19, 0.0 }
0x10dc   :  { %1817 = vadd.xlane.f32.xlu0 %v1816_v20 }
0x1169   :  { %v1818_v22 = vpop.xlane.xlu0 %1817 }
0x116a   :  { %v1823_v23 = vadd.f32 %v1897_v21, %v1818_v22 }
0x116c   :  { %1825 = vst.msk [vmem:[%s2929_s5] sm:$0x3] %vm1824_vm4, %v1823_v23 }
0x116d   :  { %1830 = vsyncpa [#allocation3], 1 }
0x116e   :  { %1831 = vsyncpa [#allocation5], 1 }
0x116f   :  { %1832 = vsyncpa [#allocation8], 1 }

</bundles_post_ra>
